<compile_context>
chip_gen: v5e
topology: v5e:2x2
jax: 0.10.0
libtpu: 0.0.40
codegen_flags: <defaults>
</compile_context>

<pallas_src>
import math

import jax
import jax.numpy as jnp
from jax.experimental import pallas as pl
from jax.experimental.pallas import tpu as pltpu


_LANE = 128
_MIB = 1 << 20


def _round_up(x, m):
    return ((x + m - 1) // m) * m


def _vmem_ceiling_bytes():
    """~75% of physical VMEM (leave headroom for compiler scratch/pipelining)."""
    try:
        cap = int(pltpu.get_tpu_info().vmem_capacity_bytes)
    except Exception:
        cap = 64 * _MIB  # conservative (v7x-sized) fallback
    return (cap * 3) // 4


def _clamp_vmem_limit(need_bytes):
    ceiling = _vmem_ceiling_bytes()
    return int(min(ceiling, max(int(need_bytes), 32 * _MIB)))


def _pick_batch_tile(batch):
    # MXU M dimension is 256 on v6e/v7x (128 on v5e); 512 only inflates the
    # f32 gate intermediates, so start at 256.
    for tb in (256, 128, 64, 32, 16, 8):
        if batch % tb == 0:
            return tb
    return batch  # full-extent block (always legal)


def _time_tile_candidates(T):
    cands = [tt for tt in (8, 6, 4, 3, 2) if T % tt == 0]
    cands.append(1)
    return cands


# ---------------------------------------------------------------------------
# Kernel 1: batch-parallel input projection  gi = x @ W_i + (b_i + b_h[rz]).
# Runs once over all T*B rows, off the recurrent critical path.
# ---------------------------------------------------------------------------
def _in_proj_kernel(x_ref, w_i_ref, b_ref, gi_ref):
    gi_ref[...] = jnp.dot(x_ref[...].astype(w_i_ref.dtype), w_i_ref[...],
                          preferred_element_type=jnp.float32) + b_ref[...]


# ---------------------------------------------------------------------------
# Kernel 2: single fused GRU step (both matmuls) — used by forward().
# ---------------------------------------------------------------------------
def _gru_cell_kernel(x_ref, h_ref, w_i_ref, w_h_ref, b_proj_ref, b_hn_ref,
                     out_ref):
    Hp = out_ref.shape[-1]
    h = h_ref[...].astype(jnp.float32)
    gi = jnp.dot(x_ref[...].astype(w_i_ref.dtype), w_i_ref[...],
                 preferred_element_type=jnp.float32) + b_proj_ref[...]
    gh = jnp.dot(h.astype(w_h_ref.dtype), w_h_ref[...],
                 preferred_element_type=jnp.float32)
    # All slices are 128-lane aligned (Hp is a multiple of 128).
    rz = jax.nn.sigmoid(gi[:, : 2 * Hp] + gh[:, : 2 * Hp])
    r = rz[:, :Hp]
    z = rz[:, Hp:]
    n = jnp.tanh(gi[:, 2 * Hp:] + r * (gh[:, 2 * Hp:] + b_hn_ref[...]))
    out_ref[...] = (n + z * (h - n)).astype(out_ref.dtype)


# ---------------------------------------------------------------------------
# Kernel 3: recurrence. grid = (B//TB, T//TT) = ("parallel", "arbitrary").
# Each grid point runs TT steps with an unrolled fori_loop; only h @ W_h is
# on the serial path (the x-projection gi is a pipelined input).
# ---------------------------------------------------------------------------
def _gru_unroll_kernel(gi_ref, keep_ref, h0_ref, w_h_ref, b_hn_ref, hs_ref,
                       h_scratch):
    Hp = h_scratch.shape[-1]
    TT = gi_ref.shape[0]

    @pl.when(pl.program_id(1) == 0)
    def _():
        h_scratch[...] = h0_ref[...].astype(jnp.float32)

    w_h = w_h_ref[...]
    b_hn = b_hn_ref[...]

    def step(i, h):
        h = h * keep_ref[i]                      # episode reset (keep = 1-done)
        gi = gi_ref[i]                           # (TB, 3Hp) precomputed x-proj
        gh = jnp.dot(h.astype(w_h.dtype), w_h,
                     preferred_element_type=jnp.float32)
        rz = jax.nn.sigmoid(gi[:, : 2 * Hp] + gh[:, : 2 * Hp])
        r = rz[:, :Hp]
        z = rz[:, Hp:]
        n = jnp.tanh(gi[:, 2 * Hp:] + r * (gh[:, 2 * Hp:] + b_hn))
        h = n + z * (h - n)
        hs_ref[i] = h.astype(hs_ref.dtype)
        return h

    h_scratch[...] = jax.lax.fori_loop(0, TT, step, h_scratch[...], unroll=True)


class GruDynamics:
    """JAX/Pallas port of recurrent_ppo.dynamics.GruDynamics."""

    def __init__(self, input_size, hidden_size, key):
        self.input_size = input_size
        self.hidden_size = hidden_size
        H = hidden_size
        Hp = _round_up(H, _LANE)
        self.hp = Hp

        # Deterministic init mirroring nn.GRUCell: U(-1/sqrt(H), 1/sqrt(H)).
        k = 1.0 / math.sqrt(H)
        keys = jax.random.split(key, 4)
        w_ih = jax.random.uniform(keys[0], (3 * H, input_size), jnp.float32, -k, k)
        w_hh = jax.random.uniform(keys[1], (3 * H, H), jnp.float32, -k, k)
        b_ih = jax.random.uniform(keys[2], (3 * H,), jnp.float32, -k, k)
        b_hh = jax.random.uniform(keys[3], (3 * H,), jnp.float32, -k, k)

        # Unpadded f32 copies (used by the pure-JAX reference / export).
        self.ref_w_i = w_ih.T                    # (I, 3H), columns [r | z | n]
        self.ref_w_h = w_hh.T                    # (H, 3H)
        self.ref_b_i = b_ih.reshape(1, 3 * H)
        self.ref_b_h = b_hh.reshape(1, 3 * H)

        def pad_gate_cols(a):                    # (rows, 3H) -> (rows, 3Hp)
            rows = a.shape[0]
            a3 = a.reshape(rows, 3, H)
            a3 = jnp.pad(a3, ((0, 0), (0, 0), (0, Hp - H)))
            return a3.reshape(rows, 3 * Hp)

        w_i = pad_gate_cols(self.ref_w_i)                       # (I, 3Hp)
        w_h = pad_gate_cols(self.ref_w_h)                       # (H, 3Hp)
        w_h = jnp.pad(w_h, ((0, Hp - H), (0, 0)))               # (Hp, 3Hp)
        b_i = pad_gate_cols(self.ref_b_i)                       # (1, 3Hp)
        b_h = pad_gate_cols(self.ref_b_h)                       # (1, 3Hp)

        # bf16 weights: full-rate MXU + half the VMEM/HBM bytes.  Biases f32.
        self.w_i = w_i.astype(jnp.bfloat16)
        self.w_h = w_h.astype(jnp.bfloat16)
        # r/z bias halves are folded into the projection bias; only b_hn must
        # stay per-step (it sits inside r * (...)).
        self.b_proj = b_i.at[:, : 2 * Hp].add(b_h[:, : 2 * Hp])  # (1, 3Hp)
        self.b_hn = b_h[:, 2 * Hp:]                               # (1, Hp)

    # --- Dynamics API -----------------------------------------------------
    def initial_state(self, batch_size):
        return jnp.zeros((batch_size, self.hidden_size), jnp.float32)

    def masked_fill_initial_state(self, h, done):
        done = jnp.asarray(done, dtype=bool)[:, None]
        return jnp.where(done, 0.0, h)

    # --- padding helpers ----------------------------------------------------
    def _pad_h(self, h):
        H, Hp = self.hidden_size, self.hp
        if Hp == H:
            return h
        return jnp.pad(h, ((0, 0), (0, Hp - H)))

    def _unpad(self, a):
        H, Hp = self.hidden_size, self.hp
        return a if Hp == H else a[..., :H]

    # --- single GRU step ----------------------------------------------------
    def forward(self, x, h):
        # Note: for repeated small-B generation, prefer unroll() — it amortizes
        # the weight DMA across all T steps.
        assert x.ndim == h.ndim and x.shape[0] == h.shape[0], "invalid x and h"
        B = h.shape[0]
        I, Hp = self.input_size, self.hp
        TB = _pick_batch_tile(B)

        need = ((I + Hp) * 3 * Hp * 2 + 4 * Hp * 4            # resident weights
                + 2 * TB * (I + 2 * Hp) * 4                   # x/h/out tiles
                + 8 * TB * 3 * Hp * 4 + 4 * _MIB)             # gate intermediates

        h_pad = self._pad_h(h)
        out = pl.pallas_call(
            _gru_cell_kernel,
            out_shape=jax.ShapeDtypeStruct((B, Hp), h.dtype),
            grid_spec=pltpu.PrefetchScalarGridSpec(
                num_scalar_prefetch=0,
                grid=(B // TB,),
                in_specs=[
                    pl.BlockSpec((TB, I), lambda i: (i, 0)),             # x
                    pl.BlockSpec((TB, Hp), lambda i: (i, 0)),            # h
                    pl.BlockSpec(memory_space=pltpu.MemorySpace.VMEM),   # W_i
                    pl.BlockSpec(memory_space=pltpu.MemorySpace.VMEM),   # W_h
                    pl.BlockSpec(memory_space=pltpu.MemorySpace.VMEM),   # b_proj
                    pl.BlockSpec(memory_space=pltpu.MemorySpace.VMEM),   # b_hn
                ],
                out_specs=pl.BlockSpec((TB, Hp), lambda i: (i, 0)),
            ),
            compiler_params=pltpu.CompilerParams(
                dimension_semantics=("parallel",),
                vmem_limit_bytes=_clamp_vmem_limit(need),
            ),
        )(x, h_pad, self.w_i, self.w_h, self.b_proj, self.b_hn)
        h_next = self._unpad(out)
        return h_next, h_next

    # --- batched input projection (off the serial path) ----------------------
    def _project_inputs(self, xs):
        T, B, I = xs.shape
        Hp = self.hp
        M = T * B
        TM = _pick_batch_tile(M)
        x2 = xs.reshape(M, I)
        need = (I * 3 * Hp * 2 + 3 * Hp * 4
                + 2 * TM * I * 4 + 4 * TM * 3 * Hp * 4 + 4 * _MIB)
        gi = pl.pallas_call(
            _in_proj_kernel,
            out_shape=jax.ShapeDtypeStruct((M, 3 * Hp), jnp.float32),
            grid_spec=pltpu.PrefetchScalarGridSpec(
                num_scalar_prefetch=0,
                grid=(M // TM,),
                in_specs=[
                    pl.BlockSpec((TM, I), lambda i: (i, 0)),
                    pl.BlockSpec(memory_space=pltpu.MemorySpace.VMEM),   # W_i
                    pl.BlockSpec(memory_space=pltpu.MemorySpace.VMEM),   # b_proj
                ],
                out_specs=pl.BlockSpec((TM, 3 * Hp), lambda i: (i, 0)),
            ),
            compiler_params=pltpu.CompilerParams(
                dimension_semantics=("parallel",),
                vmem_limit_bytes=_clamp_vmem_limit(need),
            ),
        )(x2, self.w_i, self.b_proj)
        return gi.reshape(T, B, 3 * Hp)

    # --- tile selection for the recurrence kernel ----------------------------
    def _unroll_need_bytes(self, TB, TT):
        Hp = self.hp
        return (Hp * 3 * Hp * 2 + Hp * 4                     # resident W_h, b_hn
                + 2 * TT * TB * 3 * Hp * 4                   # gi blocks (2 bufs)
                + 2 * TT * TB * _LANE * 4                    # keep (lane-padded)
                + 2 * TB * Hp * 4                            # h0 blocks
                + 2 * TT * TB * Hp * 4                       # hs out blocks
                + TB * Hp * 4                                # h scratch
                + 8 * TB * 3 * Hp * 4                        # gate intermediates
                + 4 * _MIB)

    def _choose_unroll_tiles(self, T, B):
        ceiling = _vmem_ceiling_bytes()
        tb_cands = [c for c in (256, 128, 64, 32, 16, 8) if B % c == 0] or [B]
        tt_cands = _time_tile_candidates(T)
        for tb in tb_cands:
            for tt in tt_cands:
                if self._unroll_need_bytes(tb, tt) <= ceiling:
                    return tb, tt
        return tb_cands[-1], 1

    # --- fused T-step rollout -------------------------------------------------
    def unroll(self, xs, h0, dones=None, out_dtype=None):
        """Run T GRU steps:
          1) one batch-parallel input-projection GEMM over all T*B rows,
          2) one recurrence pallas_call, grid (B//TB, T//TT), only h@W_h per step.
        dones[t, b] resets h to 0 *before* step t (== masked_fill + forward).
        Returns (hs, h_last) with hs: (T, B, hidden_size).
        """
        T, B, _ = xs.shape
        Hp = self.hp
        out_dtype = h0.dtype if out_dtype is None else out_dtype

        gi = self._project_inputs(xs)                           # (T, B, 3Hp) f32
        if dones is None:
            keep = jnp.ones((T, B, 1), jnp.float32)
        else:
            keep = 1.0 - jnp.asarray(dones, jnp.float32).reshape(T, B, 1)

        TB, TT = self._choose_unroll_tiles(T, B)
        need = self._unroll_need_bytes(TB, TT)
        h0_pad = self._pad_h(h0)

        hs = pl.pallas_call(
            _gru_unroll_kernel,
            out_shape=jax.ShapeDtypeStruct((T, B, Hp), out_dtype),
            grid_spec=pltpu.PrefetchScalarGridSpec(
                num_scalar_prefetch=0,
                grid=(B // TB, T // TT),
                in_specs=[
                    pl.BlockSpec((TT, TB, 3 * Hp), lambda b, t: (t, b, 0)),  # gi
                    pl.BlockSpec((TT, TB, 1), lambda b, t: (t, b, 0)),       # keep
                    pl.BlockSpec((TB, Hp), lambda b, t: (b, 0)),             # h0
                    pl.BlockSpec(memory_space=pltpu.MemorySpace.VMEM),       # W_h
                    pl.BlockSpec(memory_space=pltpu.MemorySpace.VMEM),       # b_hn
                ],
                out_specs=pl.BlockSpec((TT, TB, Hp), lambda b, t: (t, b, 0)),
                scratch_shapes=[pltpu.VMEM((TB, Hp), jnp.float32)],          # h
            ),
            compiler_params=pltpu.CompilerParams(
                dimension_semantics=("parallel", "arbitrary"),
                vmem_limit_bytes=_clamp_vmem_limit(need),
            ),
        )(gi, keep, h0_pad, self.w_h, self.b_hn)
        hs = self._unpad(hs)       # no-op when hidden_size is a multiple of 128
        return hs, hs[-1]


# ---------------------------------------------------------------------------
# Pure-JAX reference (same bf16-operand / f32-accumulate math as the kernels).
# ---------------------------------------------------------------------------
def _reference_step(mod, x, h):
    H = mod.hidden_size
    gi = jnp.dot(x.astype(jnp.bfloat16), mod.ref_w_i.astype(jnp.bfloat16),
                 preferred_element_type=jnp.float32) + mod.ref_b_i
    gh = jnp.dot(h.astype(jnp.bfloat16), mod.ref_w_h.astype(jnp.bfloat16),
                 preferred_element_type=jnp.float32) + mod.ref_b_h
    r = jax.nn.sigmoid(gi[:, :H] + gh[:, :H])
    z = jax.nn.sigmoid(gi[:, H:2 * H] + gh[:, H:2 * H])
    n = jnp.tanh(gi[:, 2 * H:] + r * gh[:, 2 * H:])
    return n + z * (h - n)


if __name__ == "__main__":
    key = jax.random.PRNGKey(0)
    k_mod, k_x, k_h, k_done, k_xs, k_ds = jax.random.split(key, 6)

    batch, input_size, hidden_size = 8, 32, 32
    mod = GruDynamics(input_size, hidden_size, k_mod)

    # ---- single step (forward) ----
    x = jax.random.normal(k_x, (batch, input_size), jnp.float32)
    h = jax.random.normal(k_h, (batch, hidden_size), jnp.float32)
    done = jax.random.bernoulli(k_done, 0.5, (batch,))
    h = mod.masked_fill_initial_state(h, done)

    h_next, out = mod.forward(x, h)
    jax.block_until_ready(h_next)

    ref = _reference_step(mod, x, h)
    assert h_next.shape == (batch, hidden_size)
    assert jnp.allclose(h_next, ref, atol=2e-3, rtol=2e-3), \
        float(jnp.max(jnp.abs(h_next - ref)))
    assert (h_next == out).all()

    # ---- fused T-step unroll ----
    T = 6
    xs = jax.random.normal(k_xs, (T, batch, input_size), jnp.float32)
    dones = jax.random.bernoulli(k_ds, 0.2, (T, batch))
    h0 = mod.initial_state(batch)

    hs, h_last = mod.unroll(xs, h0, dones)
    jax.block_until_ready(hs)

    h_ref = h0
    hs_ref = []
    for t in range(T):
        h_ref = mod.masked_fill_initial_state(h_ref, dones[t])
        h_ref = _reference_step(mod, xs[t], h_ref)
        hs_ref.append(h_ref)
    hs_ref = jnp.stack(hs_ref)

    assert hs.shape == (T, batch, hidden_size)
    assert jnp.allclose(hs, hs_ref, atol=2e-3, rtol=2e-3), \
        float(jnp.max(jnp.abs(hs - hs_ref)))
    assert jnp.allclose(h_last, hs_ref[-1], atol=2e-3, rtol=2e-3)

    print("KERNEL_OK")
</pallas_src>

<mosaic_0001>
module attributes {stable_mosaic.version = 11 : i64} {
  func.func @_gru_cell_kernel(%arg0: i32, %arg1: memref<8x32xf32, #tpu.memory_space<vmem>>, %arg2: memref<8x128xf32, #tpu.memory_space<vmem>>, %arg3: memref<32x384xbf16, #tpu.memory_space<vmem>>, %arg4: memref<128x384xbf16, #tpu.memory_space<vmem>>, %arg5: memref<1x384xf32, #tpu.memory_space<vmem>>, %arg6: memref<1x128xf32, #tpu.memory_space<vmem>>, %arg7: memref<8x128xf32, #tpu.memory_space<vmem>>) attributes {dimension_semantics = [#tpu.dimension_semantics<parallel>], iteration_bounds = array<i64: 1>, scalar_prefetch = 0 : i64, scratch_operands = 0 : i64, tpu.core_type = #tpu.core_type<tc>, window_params = [{transform_indices = @transform_0, window_bounds = array<i64: 8, 32>}, {transform_indices = @transform_1, window_bounds = array<i64: 8, 128>}, {pipeline_mode = #tpu.pipeline_mode<synchronous>, transform_indices = @transform_2, window_bounds = array<i64: 32, 384>}, {pipeline_mode = #tpu.pipeline_mode<synchronous>, transform_indices = @transform_3, window_bounds = array<i64: 128, 384>}, {pipeline_mode = #tpu.pipeline_mode<synchronous>, transform_indices = @transform_4, window_bounds = array<i64: 1, 384>}, {pipeline_mode = #tpu.pipeline_mode<synchronous>, transform_indices = @transform_5, window_bounds = array<i64: 1, 128>}, {transform_indices = @transform_6, window_bounds = array<i64: 8, 128>}]} {
    %c0 = arith.constant 0 : index
    %c0_0 = arith.constant 0 : index
    %0 = vector.load %arg2[%c0, %c0_0] : memref<8x128xf32, #tpu.memory_space<vmem>>, vector<8x128xf32>
    %c0_1 = arith.constant 0 : index
    %c0_2 = arith.constant 0 : index
    %1 = vector.load %arg1[%c0_1, %c0_2] : memref<8x32xf32, #tpu.memory_space<vmem>>, vector<8x32xf32>
    %2 = arith.truncf %1 : vector<8x32xf32> to vector<8x32xbf16>
    %c0_3 = arith.constant 0 : index
    %c0_4 = arith.constant 0 : index
    %3 = vector.load %arg3[%c0_3, %c0_4] : memref<32x384xbf16, #tpu.memory_space<vmem>>, vector<32x384xbf16>
    %cst = arith.constant dense<0.000000e+00> : vector<8x384xf32>
    %4 = tpu.matmul %2, %3, %cst {dimension_numbers = #tpu.dot_dimension_numbers<[1], [0], [0], [1], [0, 0, 1, 1], [], []>} : vector<8x32xbf16>, vector<32x384xbf16>, vector<8x384xf32> -> vector<8x384xf32>
    %c0_5 = arith.constant 0 : index
    %c0_6 = arith.constant 0 : index
    %5 = vector.load %arg5[%c0_5, %c0_6] : memref<1x384xf32, #tpu.memory_space<vmem>>, vector<1x384xf32>
    %6 = vector.broadcast %5 : vector<1x384xf32> to vector<8x384xf32>
    %7 = arith.addf %4, %6 : vector<8x384xf32>
    %8 = arith.truncf %0 : vector<8x128xf32> to vector<8x128xbf16>
    %c0_7 = arith.constant 0 : index
    %c0_8 = arith.constant 0 : index
    %9 = vector.load %arg4[%c0_7, %c0_8] : memref<128x384xbf16, #tpu.memory_space<vmem>>, vector<128x384xbf16>
    %cst_9 = arith.constant dense<0.000000e+00> : vector<8x384xf32>
    %10 = tpu.matmul %8, %9, %cst_9 {dimension_numbers = #tpu.dot_dimension_numbers<[1], [0], [0], [1], [0, 0, 1, 1], [], []>} : vector<8x128xbf16>, vector<128x384xbf16>, vector<8x384xf32> -> vector<8x384xf32>
    %11 = vector.extract_strided_slice %7 {offsets = [0, 0], sizes = [8, 256], strides = [1, 1]} : vector<8x384xf32> to vector<8x256xf32>
    %12 = vector.extract_strided_slice %10 {offsets = [0, 0], sizes = [8, 256], strides = [1, 1]} : vector<8x384xf32> to vector<8x256xf32>
    %13 = arith.addf %11, %12 : vector<8x256xf32>
    %14 = arith.negf %13 : vector<8x256xf32>
    %15 = math.exp %14 : vector<8x256xf32>
    %cst_10 = arith.constant 1.000000e+00 : f32
    %16 = vector.broadcast %cst_10 : f32 to vector<8x256xf32>
    %17 = arith.addf %16, %15 : vector<8x256xf32>
    %18 = arith.divf %16, %17 : vector<8x256xf32>
    %19 = vector.extract_strided_slice %18 {offsets = [0, 0], sizes = [8, 128], strides = [1, 1]} : vector<8x256xf32> to vector<8x128xf32>
    %20 = vector.extract_strided_slice %18 {offsets = [0, 128], sizes = [8, 128], strides = [1, 1]} : vector<8x256xf32> to vector<8x128xf32>
    %21 = vector.extract_strided_slice %7 {offsets = [0, 256], sizes = [8, 128], strides = [1, 1]} : vector<8x384xf32> to vector<8x128xf32>
    %22 = vector.extract_strided_slice %10 {offsets = [0, 256], sizes = [8, 128], strides = [1, 1]} : vector<8x384xf32> to vector<8x128xf32>
    %c0_11 = arith.constant 0 : index
    %c0_12 = arith.constant 0 : index
    %23 = vector.load %arg6[%c0_11, %c0_12] : memref<1x128xf32, #tpu.memory_space<vmem>>, vector<1x128xf32>
    %24 = vector.broadcast %23 : vector<1x128xf32> to vector<8x128xf32>
    %25 = arith.addf %22, %24 : vector<8x128xf32>
    %26 = arith.mulf %19, %25 : vector<8x128xf32>
    %27 = arith.addf %21, %26 : vector<8x128xf32>
    %28 = math.tanh %27 : vector<8x128xf32>
    %29 = arith.subf %0, %28 : vector<8x128xf32>
    %30 = arith.mulf %20, %29 : vector<8x128xf32>
    %31 = arith.addf %28, %30 : vector<8x128xf32>
    %c0_13 = arith.constant 0 : index
    %c0_14 = arith.constant 0 : index
    %32 = vector.load %arg7[%c0_13, %c0_14] : memref<8x128xf32, #tpu.memory_space<vmem>>, vector<8x128xf32>
    tpu.vector_store %arg7[%c0_13, %c0_14], %31 {strides = array<i32>} : memref<8x128xf32, #tpu.memory_space<vmem>>, vector<8x128xf32>,
    return
  }
  func.func @transform_0(%arg0: i32) -> (i32, i32) {
    %c0_i32 = arith.constant 0 : i32
    %c0_i32_0 = arith.constant 0 : i32
    return %arg0, %c0_i32 : i32, i32
  }
  func.func @transform_1(%arg0: i32) -> (i32, i32) {
    %c0_i32 = arith.constant 0 : i32
    %c0_i32_0 = arith.constant 0 : i32
    return %arg0, %c0_i32 : i32, i32
  }
  func.func @transform_2(%arg0: i32) -> (i32, i32) {
    %c0_i32 = arith.constant 0 : i32
    %c0_i32_0 = arith.constant 0 : i32
    %c0_i32_1 = arith.constant 0 : i32
    return %c0_i32, %c0_i32_0 : i32, i32
  }
  func.func @transform_3(%arg0: i32) -> (i32, i32) {
    %c0_i32 = arith.constant 0 : i32
    %c0_i32_0 = arith.constant 0 : i32
    %c0_i32_1 = arith.constant 0 : i32
    return %c0_i32, %c0_i32_0 : i32, i32
  }
  func.func @transform_4(%arg0: i32) -> (i32, i32) {
    %c0_i32 = arith.constant 0 : i32
    %c0_i32_0 = arith.constant 0 : i32
    %c0_i32_1 = arith.constant 0 : i32
    return %c0_i32, %c0_i32_0 : i32, i32
  }
  func.func @transform_5(%arg0: i32) -> (i32, i32) {
    %c0_i32 = arith.constant 0 : i32
    %c0_i32_0 = arith.constant 0 : i32
    %c0_i32_1 = arith.constant 0 : i32
    return %c0_i32, %c0_i32_0 : i32, i32
  }
  func.func @transform_6(%arg0: i32) -> (i32, i32) {
    %c0_i32 = arith.constant 0 : i32
    %c0_i32_0 = arith.constant 0 : i32
    return %arg0, %c0_i32 : i32, i32
  }
}

</mosaic_0001>

<bundles_post_ra>
// kernel: tpu_custom_call.1
= control target key start
LH: loop header
LB: loop body
LE: loop exit
PB: predicated region body
PF: predicated region fallthrough
CT: control target
= control target key end

     0   :  { %11 = vsyncpa [#allocation3], 0  ;;  %s826_s0 = inlined_call_operand.hbm [shape: f32[8,32], index: 0, kind: input, shape index: {}]   ;;  %s827_s1 = inlined_call_operand.hbm [shape: f32[8,128], index: 1, kind: input, shape index: {}]   ;;  %s828_s2 = inlined_call_operand.hbm [shape: bf16[32,384], index: 2, kind: input, shape index: {}]   ;;  %s829_s3 = inlined_call_operand.hbm [shape: bf16[128,384], index: 3, kind: input, shape index: {}]   ;;  %s830_s4 = inlined_call_operand.vmem [shape: f32[1,384], index: 4, kind: input, shape index: {}]   ;;  %s831_s5 = inlined_call_operand.vmem [shape: f32[1,128], index: 5, kind: input, shape index: {}]   ;;  %s832_s6 = inlined_call_operand.hbm [shape: f32[8,128], index: 6, kind: output, shape index: {}]  }
   0x1   :  { %12 = vsyncpa [#allocation6], 0 }
   0x2   :  { %13 = vsyncpa [#allocation9], 0  ;;  %s31_s23 = sshll.u32 %s827_s1, 4  ;;  %s32_s23 = int_to_ptr.hbm [resolvable:$true] %s31_s23 }
   0x3   :  { %14 = vsyncpa [#allocation4], 0  ;;  %s750_s24 = smov [#allocation5]   ;;  %s20_s28 = sshll.u32 %s826_s0, 4  ;;  %s21_s28 = int_to_ptr.hbm [resolvable:$true] %s20_s28 }
   0x4   :  { %s33_s25 = sshll.u32 %s750_s24, 4  ;;  %s751_s29 = smov [#allocation2]   ;;  %s34_s25 = int_to_ptr.vmem [resolvable:$true] %s33_s25 }
   0x5   :  { %36 = dma.hbm_to_vmem [thread:$0]  %s32_s23, 128, %s34_s25, [#allocation6]  }
   0x6   :  { %s22_s30 = sshll.u32 %s751_s29, 4  ;;  %s41_s9 = sshll.u32 %s828_s2, 4  ;;  %s23_s30 = int_to_ptr.vmem [resolvable:$true] %s22_s30  ;;  %s42_s9 = int_to_ptr.hbm [resolvable:$true] %s41_s9 }
   0x7   :  { %25 = dma.hbm_to_vmem [thread:$0]  %s21_s28, 128, %s23_s30, [#allocation3]  }
   0x8   :  { %s752_s1 = smov [#allocation7]   ;;  %s54_s13 = sshll.u32 %s829_s3, 4  ;;  %s55_s13 = int_to_ptr.hbm [resolvable:$true] %s54_s13 }
   0x9   :  { %s43_s10 = sshll.u32 %s752_s1, 4  ;;  %s753_s14 = smov 192   ;;  %s44_s10 = int_to_ptr.vmem [resolvable:$true] %s43_s10 }
   0xa   :  { %s754_s0 = smov 12   ;;  %s755_s15 = smov [#allocation8]  }
   0xb   :  { %49 = dma.hbm_to_vmem [thread:$0]  %s42_s9, 768, %s44_s10, [#allocation6], %s753_s14, %s753_s14, %s754_s0  }
   0xc   :  { %s56_s16 = sshll.u32 %s755_s15, 4  ;;  %s57_s16 = int_to_ptr.vmem [resolvable:$true] %s56_s16 }
   0xd   :  { %62 = dma.hbm_to_vmem [thread:$0]  %s55_s13, 3072, %s57_s16, [#allocation9], %s753_s14, %s753_s14, %s754_s0  }
   0xe   :  { %742 = dma.done.wait [#allocation3], 128  }
   0xf   :  { %743 = vsyncadd [#allocation3], 4294967168 }
  0x10   :  { %744 = dma.done.wait [#allocation6], 896  }
  0x11   :  { %745 = vsyncadd [#allocation6], 4294966400 }
  0x12   :  { %746 = dma.done.wait [#allocation9], 3072  }
  0x13   :  { %747 = vsyncadd [#allocation9], 4294964224  ;;  %v562_v0 = vld [vmem:[#allocation8 + $0xa8] sm:$0xf]  ;;  %v602_v1 = vld [vmem:[#allocation8 + $0xb0] sm:$0xf0] }
  0x14   :  { %v550_v2 = vld [vmem:[#allocation8 + $0x90] sm:$0xf]  ;;  %v563_v3 = vor.u32 %v602_v1, %v562_v0  ;;  %v599_v4 = vld [vmem:[#allocation8 + $0x98] sm:$0xf0]  ;;  %v601_v5 = vld [vmem:[#allocation8 + $0xac] sm:$0xf] }
  0x15   :  { %v564_v6 = vld [vmem:[#allocation8 + $0xb4] sm:$0xf0]  ;;  %v598_v8 = vld [vmem:[#allocation8 + $0x94] sm:$0xf]  ;;  %v551_v9 = vor.u32 %v599_v4, %v550_v2  ;;  %v552_v11 = vld [vmem:[#allocation8 + $0x9c] sm:$0xf0] }
  0x16   :  { %v567_v7 = vor.u32 %v601_v5, %v564_v6  ;;  %339 = vmatpush.bf16.msra.mxu3 %v563_v3  ;;  %v538_v10 = vld [vmem:[#allocation8 + $0x78] sm:$0xf]  ;;  %v596_v12 = vld [vmem:[#allocation8 + $0x80] sm:$0xf0]  ;;  %v555_v13 = vor.u32 %v598_v8, %v552_v11  ;;  %v463_v14 = vld [vmem:[#allocation7 + $0x18] sm:$0xf] }
  0x17   :  { %v578_v15 = vld [vmem:[#allocation7 + $0x20] sm:$0xf0]  ;;  %v595_v17 = vld [vmem:[#allocation8 + $0x7c] sm:$0xf]  ;;  %v540_v18 = vld [vmem:[#allocation8 + $0x84] sm:$0xf0]  ;;  %v539_v21 = vor.u32 %v596_v12, %v538_v10 }
  0x18   :  { %352 = vmatpush.bf16.msra.mxu0 %v567_v7  ;;  %v464_v16 = vor.u32 %v578_v15, %v463_v14  ;;  %v451_v19 = vld [vmem:[#allocation7] sm:$0xf]  ;;  %v575_v20 = vld [vmem:[#allocation7 + $0x8] sm:$0xf0]  ;;  %v526_v22 = vld [vmem:[#allocation8 + $0x60] sm:$0xf]  ;;  %v543_v25 = vor.u32 %v595_v17, %v540_v18 }
  0x19   :  { %v593_v23 = vld [vmem:[#allocation8 + $0x68] sm:$0xf0]  ;;  %v452_v24 = vor.u32 %v575_v20, %v451_v19  ;;  %v85_v26 = vld [vmem:[#allocation2] sm:$0xff]  ;;  %v465_v28 = vld [vmem:[#allocation7 + $0x24] sm:$0xf0]  ;;  %vm135_vm0 = vcmask 261120  }
  0x1a   :  { %340 = vmatpush.bf16.msra.mxu3 %v551_v9  ;;  %145 = vmatpush.bf16.msra.mxu2 %v464_v16  ;;  %v577_v27 = vld [vmem:[#allocation7 + $0x1c] sm:$0xf]  ;;  %v592_v29 = vld [vmem:[#allocation8 + $0x64] sm:$0xf]  ;;  %v528_v30 = vld [vmem:[#allocation8 + $0x6c] sm:$0xf0]  ;;  %v804_v32 = vpack.c.bf16 %v85_v26, %v85_v26  ;;  %v527_v35 = vor.u32 %v593_v23, %v526_v22 }
  0x1b   :  { %v468_v31 = vor.u32 %v577_v27, %v465_v28  ;;  %v574_v33 = vld [vmem:[#allocation7 + $0x4] sm:$0xf]  ;;  %v453_v34 = vld [vmem:[#allocation7 + $0xc] sm:$0xf0]  ;;  %v570_v36 = vld [vmem:[#allocation8 + $0xb0] sm:$0xf]  ;;  %v531_v39 = vor.u32 %v592_v29, %v528_v30 }
  0x1c   :  { %353 = vmatpush.bf16.msra.mxu0 %v555_v13  ;;  %v514_v37 = vld [vmem:[#allocation8 + $0x48] sm:$0xf]  ;;  %v590_v38 = vld [vmem:[#allocation8 + $0x50] sm:$0xf0]  ;;  %v456_v40 = vor.u32 %v574_v33, %v453_v34  ;;  %v603_v41 = vld [vmem:[#allocation8 + $0xb8] sm:$0xf0] }
  0x1d   :  { %158 = vmatpush.bf16.msra.mxu1 %v468_v31  ;;  %v589_v42 = vld [vmem:[#allocation8 + $0x4c] sm:$0xf]  ;;  %v516_v43 = vld [vmem:[#allocation8 + $0x54] sm:$0xf0]  ;;  %v571_v44 = vor.u32 %v603_v41, %v570_v36  ;;  %v600_v46 = vld [vmem:[#allocation8 + $0xa0] sm:$0xf0]  ;;  %v515_v47 = vor.u32 %v590_v38, %v514_v37 }
  0x1e   :  { %341 = vmatpush.bf16.msra.mxu3 %v539_v21  ;;  %146 = vmatpush.bf16.msra.mxu2 %v452_v24  ;;  %v558_v45 = vld [vmem:[#allocation8 + $0x98] sm:$0xf]  ;;  %v502_v48 = vld [vmem:[#allocation8 + $0x30] sm:$0xf]  ;;  %v587_v49 = vld [vmem:[#allocation8 + $0x38] sm:$0xf0]  ;;  %v519_v50 = vor.u32 %v589_v42, %v516_v43 }
  0x1f   :  { %v586_v51 = vld [vmem:[#allocation8 + $0x34] sm:$0xf]  ;;  %v504_v52 = vld [vmem:[#allocation8 + $0x3c] sm:$0xf0]  ;;  %v559_v53 = vor.u32 %v600_v46, %v558_v45  ;;  %v471_v54 = vld [vmem:[#allocation7 + $0x20] sm:$0xf]  ;;  %v503_v60 = vor.u32 %v587_v49, %v502_v48 }
  0x20   :  { %354 = vmatpush.bf16.msra.mxu0 %v543_v25  ;;  %v579_v55 = vld [vmem:[#allocation7 + $0x28] sm:$0xf0]  ;;  %v546_v56 = vld [vmem:[#allocation8 + $0x80] sm:$0xf]  ;;  %v597_v57 = vld [vmem:[#allocation8 + $0x88] sm:$0xf0]  ;;  %v507_v0 = vor.u32 %v586_v51, %v504_v52 }
  0x21   :  { %473 = vmatmul.msk.bf16.vlgmr.msra.gmra.mxu2 %vm135_vm0, %v804_v32  ;;  %159 = vmatpush.bf16.msra.mxu1 %v456_v40  ;;  %v472_v58 = vor.u32 %v579_v55, %v471_v54  ;;  %v459_v59 = vld [vmem:[#allocation7 + $0x8] sm:$0xf]  ;;  %v576_v61 = vld [vmem:[#allocation7 + $0x10] sm:$0xf0]  ;;  %v583_v2 = vld [vmem:[#allocation8 + $0x1c] sm:$0xf]  ;;  %v547_v4 = vor.u32 %v597_v57, %v546_v56 }
  0x22   :  { %342 = vmatpush.bf16.msra.mxu3 %v527_v35  ;;  %v490_v62 = vld [vmem:[#allocation8 + $0x18] sm:$0xf]  ;;  %v584_v63 = vld [vmem:[#allocation8 + $0x20] sm:$0xf0]  ;;  %v460_v1 = vor.u32 %v576_v61, %v459_v59  ;;  %v492_v3 = vld [vmem:[#allocation8 + $0x24] sm:$0xf0] }
  0x23   :  { %171 = vmatpush.bf16.msrb.mxu2 %v472_v58  ;;  %v534_v5 = vld [vmem:[#allocation8 + $0x68] sm:$0xf]  ;;  %v594_v6 = vld [vmem:[#allocation8 + $0x70] sm:$0xf0]  ;;  %v491_v7 = vor.u32 %v584_v63, %v490_v62  ;;  %v478_v8 = vld [vmem:[#allocation8] sm:$0xf]  ;;  %v495_v10 = vor.u32 %v583_v2, %v492_v3 }
  0x24   :  { %355 = vmatpush.bf16.msra.mxu0 %v531_v39  ;;  %474 = vmatmul.msk.bf16.vlgmr.msra.gmra.mxu1 %vm135_vm0, %v804_v32  ;;  %v581_v9 = vld [vmem:[#allocation8 + $0x8] sm:$0xf0]  ;;  %v580_v11 = vld [vmem:[#allocation8 + $0x4] sm:$0xf]  ;;  %v480_v12 = vld [vmem:[#allocation8 + $0xc] sm:$0xf0]  ;;  %v535_v13 = vor.u32 %v594_v6, %v534_v5 }
  0x25   :  { %365 = vmatpush.bf16.msrb.mxu1 %v571_v44  ;;  %v522_v14 = vld [vmem:[#allocation8 + $0x50] sm:$0xf]  ;;  %v591_v15 = vld [vmem:[#allocation8 + $0x58] sm:$0xf0]  ;;  %v479_v16 = vor.u32 %v581_v9, %v478_v8  ;;  %v810_v17 = vld [vmem:[#allocation5] sm:$0xff]  ;;  %v483_v18 = vor.u32 %v580_v11, %v480_v12  ;;  %s437_s21 = sshll.u32 %s832_s6, 4  ;;  %s438_s21 = int_to_ptr.hbm [resolvable:$true] %s437_s21 }
  0x26   :  { %343 = vmatpush.bf16.msra.mxu3 %v515_v47  ;;  %v523_v19 = vor.u32 %v591_v15, %v522_v14  ;;  %v178_v20 = vpack.c.bf16 %v810_v17, %v810_v17  ;;  %v510_v21 = vld [vmem:[#allocation8 + $0x38] sm:$0xf]  ;;  %v588_v22 = vld [vmem:[#allocation8 + $0x40] sm:$0xf0]  ;;  %v498_v24 = vld [vmem:[#allocation8 + $0x20] sm:$0xf] }
  0x27   :  { %172 = vmatpush.bf16.msrb.mxu2 %v460_v1  ;;  %v511_v23 = vor.u32 %v588_v22, %v510_v21  ;;  %v585_v25 = vld [vmem:[#allocation8 + $0x28] sm:$0xf0]  ;;  %v486_v27 = vld [vmem:[#allocation8 + $0x8] sm:$0xf]  ;;  %v582_v28 = vld [vmem:[#allocation8 + $0x10] sm:$0xf0] }
  0x28   :  { %356 = vmatpush.bf16.msra.mxu0 %v519_v50  ;;  %v499_v26 = vor.u32 %v585_v25, %v498_v24  ;;  %v487_v29 = vor.u32 %v582_v28, %v486_v27  ;;  %v611_v59 = vld [vmem:[%s831_s5] ss:$0 sm:$0xff]  ;;  %s756_s5 = smov [#allocation10]  }
  0x29   :  { %366 = vmatpush.bf16.msrb.mxu1 %v559_v53  ;;  %s435_s18 = sshll.u32 %s756_s5, 4  ;;  %s436_s18 = int_to_ptr.vmem [resolvable:$true] %s435_s18 }
  0x2a   :  { %344 = vmatpush.bf16.msra.mxu3 %v503_v60 }
  0x2c   :  { %357 = vmatpush.bf16.msra.mxu0 %v507_v0 }
  0x2d   :  { %367 = vmatpush.bf16.msrb.mxu1 %v547_v4 }
  0x2e   :  { %345 = vmatpush.bf16.msra.mxu3 %v491_v7 }
  0x30   :  { %358 = vmatpush.bf16.msra.mxu0 %v495_v10 }
  0x31   :  { %368 = vmatpush.bf16.msrb.mxu1 %v535_v13  ;;  %475 = vmatmul.msk.bf16.vlgmr.msrb.gmra.mxu2 %vm135_vm0, %v804_v32  ;;  %v95_v32 = vld [vmem:[%s830_s4] sm:$0x7] }
  0x32   :  { %346 = vmatpush.bf16.msra.mxu3 %v479_v16  ;;  %v98_v35 = vperm.slane %v95_v32, 1  ;;  %v97_v37 = vperm.slane %v95_v32, 0  ;;  %v99_v0 = vperm.slane %v95_v32, 2 }
  0x34   :  { %359 = vmatpush.bf16.msra.mxu0 %v483_v18 }
  0x35   :  { %369 = vmatpush.bf16.msrb.mxu1 %v523_v19  ;;  %347 = vmatmul.bf16.vlgmr.msra.gmra.mxu3 %v178_v20 }
  0x37   :  { %360 = vmatmul.bf16.vlgmr.msra.gmra.mxu0 %v178_v20 }
  0x39   :  { %370 = vmatpush.bf16.msrb.mxu1 %v511_v23 }
  0x3d   :  { %371 = vmatpush.bf16.msrb.mxu1 %v499_v26 }
  0x41   :  { %372 = vmatpush.bf16.msrb.mxu1 %v487_v29 }
  0x44   :  { %373 = vmatmul.bf16.vlgmr.msrb.gmra.mxu1 %v178_v20 }
  0xa1   :  { %v161_v30 = vpop.f32.mrf.mxu1 }
  0xa2   :  { %v162_v36 = vadd.f32 %v161_v30, %v98_v35 }
  0xa4   :  { %v148_v31 = vpop.f32.mrf.mxu2 }
  0xa5   :  { %v149_v41 = vadd.f32 %v148_v31, %v97_v37 }
  0xa9   :  { %v163_v33 = vpop.f32.mrf.mxu1 }
  0xac   :  { %v150_v34 = vpop.f32.mrf.mxu2 }
  0xb4   :  { %v361_v38 = vpop.f32.mrf.mxu0  ;;  %v174_v40 = vpop.f32.mrf.mxu2 }
  0xb5   :  { %v379_v39 = vadd.f32 %v361_v38, %v162_v36  ;;  %v175_v6 = vadd.f32 %v174_v40, %v99_v0 }
  0xb7   :  { %v573_v42 = vmul.f32 -1.442695, %v379_v39 }
  0xb8   :  { %v348_v43 = vpop.f32.mrf.mxu3 }
  0xb9   :  { %v378_v44 = vadd.f32 %v348_v43, %v149_v41  ;;  %612 = vpow2.f32 %v573_v42 }
  0xbb   :  { %v572_v45 = vmul.f32 -1.442695, %v378_v44 }
  0xbc   :  { %v363_v46 = vpop.f32.mrf.mxu0  ;;  %v176_v47 = vpop.f32.mrf.mxu2 }
  0xbd   :  { %614 = vpow2.f32 %v572_v45 }
  0xbf   :  { %v613_v48 = vpop.eup %612 }
  0xc0   :  { %v350_v49 = vpop.f32.mrf.mxu3  ;;  %v387_v52 = vadd.f32 1.0, %v613_v48 }
  0xc1   :  { %v374_v50 = vpop.f32.mrf.mxu1 }
  0xc2   :  { %v422_v2 = vadd.f32 %v611_v59, %v374_v50  ;;  %vm408_vm5 = vweird.f32 %v387_v52  ;;  %v414_v11 = vand.u32 2147483648, %v387_v52  ;;  %v412_v13 = vand.u32 2147483647, %v387_v52 }
  0xc3   :  { %v615_v51 = vpop.eup %614 }
  0xc4   :  { %v386_v53 = vadd.f32 1.0, %v615_v51  ;;  %v415_v14 = vor.u32 1.1754944e-38, %v414_v11  ;;  %vm413_vm8 = vcmp.eq.f32.partialorder %v412_v13, 8.507059e+37 }
  0xc6   :  { %616 = vrcp.f32 %v386_v53  ;;  %v399_v61 = vand.u32 2147483648, %v386_v53  ;;  %v397_v63 = vand.u32 2147483647, %v386_v53  ;;  %vm393_vm2 = vweird.f32 %v386_v53 }
  0xc7   :  { %618 = vrcp.f32 %v387_v52 }
  0xc8   :  { %v400_v4 = vor.u32 1.1754944e-38, %v399_v61  ;;  %vm398_vm4 = vcmp.eq.f32.partialorder %v397_v63, 8.507059e+37 }
  0xc9   :  { %v376_v54 = vpop.f32.mrf.mxu1 }
  0xcc   :  { %v617_v55 = vpop.eup %616 }
  0xcd   :  { %v619_v56 = vpop.eup %618  ;;  %v389_v57 = vmul.f32 %v617_v55, %v386_v53  ;;  %vm394_vm1 = vweird.f32 %v617_v55 }
  0xce   :  { %v404_v60 = vmul.f32 %v619_v56, %v387_v52  ;;  %vm395_vm3 = vmor %vm393_vm2, %vm394_vm1  ;;  %vm409_vm6 = vweird.f32 %v619_v56 }
  0xcf   :  { %v390_v58 = vsub.f32 1.0, %v389_v57  ;;  %vm410_vm7 = vmor %vm408_vm5, %vm409_vm6 }
  0xd0   :  { %v405_v3 = vsub.f32 1.0, %v404_v60 }
  0xd1   :  { %v391_v62 = vmul.f32 %v617_v55, %v390_v58 }
  0xd2   :  { %v406_v9 = vmul.f32 %v619_v56, %v405_v3 }
  0xd3   :  { %v392_v1 = vadd.f32 %v617_v55, %v391_v62 }
  0xd4   :  { %v407_v12 = vadd.f32 %v619_v56, %v406_v9 }
  0xd5   :  { %v396_v5 = vsel %vm395_vm3, %v617_v55, %v392_v1 }
  0xd6   :  { %v401_v7 = vsel %vm398_vm4, %v400_v4, %v396_v5  ;;  %v411_v15 = vsel %vm410_vm7, %v619_v56, %v407_v12 }
  0xd7   :  { %v423_v8 = vmul.f32 %v422_v2, %v401_v7  ;;  %v416_v19 = vsel %vm413_vm8, %v415_v14, %v411_v15 }
  0xd9   :  { %v424_v10 = vadd.f32 %v423_v8, %v175_v6 }
  0xdb   :  { %620 = vtanh.f32 %v424_v10 }
  0xe1   :  { %v621_v16 = vpop.eup %620 }
  0xe2   :  { %v426_v18 = vsub.f32 %v810_v17, %v621_v16 }
  0xe4   :  { %v427_v20 = vmul.f32 %v426_v18, %v416_v19 }
  0xe6   :  { %v428_v21 = vadd.f32 %v621_v16, %v427_v20 }
  0xe8   :  { %429 = vst [vmem:[#allocation10] sm:$0xff] %v428_v21 }
  0xe9   :  { %440 = dma.vmem_to_hbm [thread:$0]  %s436_s18, 128, %s438_s21, [#allocation4]  }
  0xea   :  { %748 = dma.done.wait [#allocation4], 128  }
  0xeb   :  { %749 = vsyncadd [#allocation4], 4294967168 }
  0xec   :  { %445 = vsyncpa [#allocation3], 1 }
  0xed   :  { %446 = vsyncpa [#allocation6], 1 }
  0xee   :  { %447 = vsyncpa [#allocation9], 1 }
  0xef   :  { %448 = vsyncpa [#allocation4], 1 }

</bundles_post_ra>
